<compile_context>
chip_gen: v5e
topology: v5e:2x2
jax: 0.10.0
libtpu: 0.0.40
codegen_flags: <defaults>
</compile_context>

<pallas_src>
import jax
import jax.numpy as jnp
from jax.experimental import pallas as pl
from jax.experimental.pallas import tpu as pltpu


def ann_kernel(x_ref, w1_ref, b1_ref, w2t_ref, b2_ref, w3t_ref, b3_ref,
               w4t_ref, b4_ref, o_ref):
    # ---- layer 1 (batch on sublanes): (tb, in) @ (in, h1) + b1 -> ReLU ----
    h = jnp.dot(x_ref[...], w1_ref[...], preferred_element_type=jnp.float32)
    h = jnp.maximum(h + b1_ref[...], 0.0)                     # (tb, h1)

    # ---- switch to batch-on-lanes: one in-VMEM transpose, then lane-dense ----
    ht = h.T                                                  # (h1, tb), XLU transpose

    # layer 2 + ReLU
    ht = jnp.dot(w2t_ref[...], ht, preferred_element_type=jnp.float32)
    ht = jnp.maximum(ht + b2_ref[...], 0.0)                   # (h2, tb)

    # dropout: eval mode -> identity

    # layer 3 + ReLU
    ht = jnp.dot(w3t_ref[...], ht, preferred_element_type=jnp.float32)
    ht = jnp.maximum(ht + b3_ref[...], 0.0)                   # (h3, tb)

    # output layer (no activation): (out_f, h3) @ (h3, tb) -> lane-dense (out_f, tb)
    out = jnp.dot(w4t_ref[...], ht, preferred_element_type=jnp.float32)
    o_ref[...] = (out + b4_ref[...]).astype(o_ref.dtype)


def _tile_rows(batch, block_b):
    """Batch-tile size satisfying the (8,128) BlockSpec rule.

    Either tb == batch (single step; 'equals full array dim' exemption) or tb is a
    multiple of 128 (legal for both the (tb, in) input block and the (out, tb) output
    block), capped near B/2 so the grid has >=2 steps for v7x's two TensorCores.
    """
    block_b = max(128, (block_b // 128) * 128)
    if batch <= 256:
        return batch
    half = ((batch + 1) // 2 + 127) // 128 * 128   # ~B/2 rounded up to 128
    return min(block_b, half)


def ann_forward(x, params, *, block_b=2048):
    """x: [B, input_size] f32.  params: list of (W [in, out], b [1, out])."""
    (w1, b1), (w2, b2), (w3, b3), (w4, b4) = params
    B, in_f = x.shape
    h1, h2, h3 = w1.shape[1], w2.shape[1], w3.shape[1]
    out_f = w4.shape[1]

    # Tiny one-time re-layouts (a few KB total): layers 2..4 weights go to (out, in)
    # so they run with batch on lanes; their biases become column vectors.
    w2t, w3t, w4t = w2.T, w3.T, w4.T
    b1r = b1.reshape(1, h1)
    b2c, b3c, b4c = b2.reshape(h2, 1), b3.reshape(h3, 1), b4.reshape(out_f, 1)

    tb = _tile_rows(B, block_b)
    grid = (pl.cdiv(B, tb),)   # ragged last tile handled by Pallas (masked writes)

    flops = 2 * B * (in_f * h1 + h1 * h2 + h2 * h3 + h3 * out_f)
    bytes_accessed = 4 * (B * (in_f + out_f)
                          + in_f * h1 + h1 * h2 + h2 * h3 + h3 * out_f
                          + h1 + h2 + h3 + out_f)

    out_t = pl.pallas_call(
        ann_kernel,
        out_shape=jax.ShapeDtypeStruct((out_f, B), x.dtype),
        grid=grid,
        in_specs=[
            pl.BlockSpec((tb, in_f), lambda i: (i, 0)),      # x: tiled over batch, unpadded
            pl.BlockSpec((in_f, h1), lambda i: (0, 0)),      # weights/biases: constant block
            pl.BlockSpec((1, h1), lambda i: (0, 0)),         # index -> fetched once, VMEM-resident
            pl.BlockSpec((h2, h1), lambda i: (0, 0)),        # w2^T (out, in)
            pl.BlockSpec((h2, 1), lambda i: (0, 0)),
            pl.BlockSpec((h3, h2), lambda i: (0, 0)),        # w3^T
            pl.BlockSpec((h3, 1), lambda i: (0, 0)),
            pl.BlockSpec((out_f, h3), lambda i: (0, 0)),     # w4^T
            pl.BlockSpec((out_f, 1), lambda i: (0, 0)),
        ],
        out_specs=pl.BlockSpec((out_f, tb), lambda i: (0, i)),   # lane-dense output row
        compiler_params=pltpu.CompilerParams(
            dimension_semantics=("parallel",)),
        cost_estimate=pl.CostEstimate(
            flops=flops, transcendentals=0, bytes_accessed=bytes_accessed),
    )(x, w1, b1r, w2t, b2c, w3t, b3c, w4t, b4c)

    # (out_f, B) -> (B, out_f); for out_f == 1 this is a free (layout-identical) reshape.
    return out_t.T


def init_linear(key, in_features, out_features):
    """Deterministic PyTorch-style init: U(-1/sqrt(in), 1/sqrt(in))."""
    kw, kb = jax.random.split(key)
    bound = 1.0 / jnp.sqrt(jnp.float32(in_features))
    W = jax.random.uniform(kw, (in_features, out_features), jnp.float32,
                           minval=-bound, maxval=bound)
    b = jax.random.uniform(kb, (1, out_features), jnp.float32,
                           minval=-bound, maxval=bound)
    return W, b


if __name__ == "__main__":
    # Module hyperparameters (docstring: input 8, output 1).
    input_size = 8
    output_size = 1
    hidden_sizes = [32, 32, 32]
    batch = 8

    root = jax.random.PRNGKey(0)
    kx, k1, k2, k3, k4 = jax.random.split(root, 5)

    x = jax.random.normal(kx, (batch, input_size), jnp.float32)

    params = [
        init_linear(k1, input_size, hidden_sizes[0]),
        init_linear(k2, hidden_sizes[0], hidden_sizes[1]),
        init_linear(k3, hidden_sizes[1], hidden_sizes[2]),
        init_linear(k4, hidden_sizes[2], output_size),
    ]

    out = ann_forward(x, params)
    jax.block_until_ready(out)

    # Pure-JAX reference (eval-mode dropout = identity).
    h = x
    for i, (W, b) in enumerate(params):
        h = h @ W + b
        if i < 3:
            h = jnp.maximum(h, 0.0)
    ref = h

    assert out.shape == (batch, output_size)
    assert jnp.allclose(out, ref, atol=1e-4, rtol=1e-4), (
        f"max abs err {jnp.max(jnp.abs(out - ref))}")

    print("KERNEL_OK")
</pallas_src>

<mosaic_0001>
module attributes {stable_mosaic.version = 11 : i64} {
  func.func @ann_kernel(%arg0: i32, %arg1: memref<8x8xf32, #tpu.memory_space<vmem>>, %arg2: memref<8x32xf32, #tpu.memory_space<vmem>>, %arg3: memref<1x32xf32, #tpu.memory_space<vmem>>, %arg4: memref<32x32xf32, #tpu.memory_space<vmem>>, %arg5: memref<32x1xf32, #tpu.memory_space<vmem>>, %arg6: memref<32x32xf32, #tpu.memory_space<vmem>>, %arg7: memref<32x1xf32, #tpu.memory_space<vmem>>, %arg8: memref<1x32xf32, #tpu.memory_space<vmem>>, %arg9: memref<1x1xf32, #tpu.memory_space<vmem>>, %arg10: memref<1x8xf32, #tpu.memory_space<vmem>>) attributes {dimension_semantics = [#tpu.dimension_semantics<parallel>], iteration_bounds = array<i64: 1>, scalar_prefetch = 0 : i64, scratch_operands = 0 : i64, tpu.core_type = #tpu.core_type<tc>, window_params = [{transform_indices = @transform_0, window_bounds = array<i64: 8, 8>}, {pipeline_mode = #tpu.pipeline_mode<synchronous>, transform_indices = @transform_1, window_bounds = array<i64: 8, 32>}, {pipeline_mode = #tpu.pipeline_mode<synchronous>, transform_indices = @transform_2, window_bounds = array<i64: 1, 32>}, {pipeline_mode = #tpu.pipeline_mode<synchronous>, transform_indices = @transform_3, window_bounds = array<i64: 32, 32>}, {pipeline_mode = #tpu.pipeline_mode<synchronous>, transform_indices = @transform_4, window_bounds = array<i64: 32, 1>}, {pipeline_mode = #tpu.pipeline_mode<synchronous>, transform_indices = @transform_5, window_bounds = array<i64: 32, 32>}, {pipeline_mode = #tpu.pipeline_mode<synchronous>, transform_indices = @transform_6, window_bounds = array<i64: 32, 1>}, {pipeline_mode = #tpu.pipeline_mode<synchronous>, transform_indices = @transform_7, window_bounds = array<i64: 1, 32>}, {pipeline_mode = #tpu.pipeline_mode<synchronous>, transform_indices = @transform_8, window_bounds = array<i64: 1, 1>}, {transform_indices = @transform_9, window_bounds = array<i64: 1, 8>}]} {
    %c0 = arith.constant 0 : index
    %c0_0 = arith.constant 0 : index
    %0 = vector.load %arg1[%c0, %c0_0] : memref<8x8xf32, #tpu.memory_space<vmem>>, vector<8x8xf32>
    %c0_1 = arith.constant 0 : index
    %c0_2 = arith.constant 0 : index
    %1 = vector.load %arg2[%c0_1, %c0_2] : memref<8x32xf32, #tpu.memory_space<vmem>>, vector<8x32xf32>
    %cst = arith.constant dense<0.000000e+00> : vector<8x32xf32>
    %2 = tpu.matmul %0, %1, %cst {dimension_numbers = #tpu.dot_dimension_numbers<[1], [0], [0], [1], [0, 0, 1, 1], [], []>} : vector<8x8xf32>, vector<8x32xf32>, vector<8x32xf32> -> vector<8x32xf32>
    %c0_3 = arith.constant 0 : index
    %c0_4 = arith.constant 0 : index
    %3 = vector.load %arg3[%c0_3, %c0_4] : memref<1x32xf32, #tpu.memory_space<vmem>>, vector<1x32xf32>
    %4 = vector.broadcast %3 : vector<1x32xf32> to vector<8x32xf32>
    %5 = arith.addf %2, %4 : vector<8x32xf32>
    %cst_5 = arith.constant 0.000000e+00 : f32
    %6 = vector.broadcast %cst_5 : f32 to vector<8x32xf32>
    %7 = arith.maximumf %5, %6 : vector<8x32xf32>
    %8 = tpu.transpose %7, [1, 0] : vector<8x32xf32> -> vector<32x8xf32>
    %c0_6 = arith.constant 0 : index
    %c0_7 = arith.constant 0 : index
    %9 = vector.load %arg4[%c0_6, %c0_7] : memref<32x32xf32, #tpu.memory_space<vmem>>, vector<32x32xf32>
    %cst_8 = arith.constant dense<0.000000e+00> : vector<32x8xf32>
    %10 = tpu.matmul %9, %8, %cst_8 {dimension_numbers = #tpu.dot_dimension_numbers<[1], [0], [0], [1], [0, 0, 1, 1], [], []>} : vector<32x32xf32>, vector<32x8xf32>, vector<32x8xf32> -> vector<32x8xf32>
    %c0_9 = arith.constant 0 : index
    %c0_10 = arith.constant 0 : index
    %11 = vector.load %arg5[%c0_9, %c0_10] : memref<32x1xf32, #tpu.memory_space<vmem>>, vector<32x1xf32>
    %12 = vector.broadcast %11 : vector<32x1xf32> to vector<32x8xf32>
    %13 = arith.addf %10, %12 : vector<32x8xf32>
    %cst_11 = arith.constant 0.000000e+00 : f32
    %14 = vector.broadcast %cst_11 : f32 to vector<32x8xf32>
    %15 = arith.maximumf %13, %14 : vector<32x8xf32>
    %c0_12 = arith.constant 0 : index
    %c0_13 = arith.constant 0 : index
    %16 = vector.load %arg6[%c0_12, %c0_13] : memref<32x32xf32, #tpu.memory_space<vmem>>, vector<32x32xf32>
    %cst_14 = arith.constant dense<0.000000e+00> : vector<32x8xf32>
    %17 = tpu.matmul %16, %15, %cst_14 {dimension_numbers = #tpu.dot_dimension_numbers<[1], [0], [0], [1], [0, 0, 1, 1], [], []>} : vector<32x32xf32>, vector<32x8xf32>, vector<32x8xf32> -> vector<32x8xf32>
    %c0_15 = arith.constant 0 : index
    %c0_16 = arith.constant 0 : index
    %18 = vector.load %arg7[%c0_15, %c0_16] : memref<32x1xf32, #tpu.memory_space<vmem>>, vector<32x1xf32>
    %19 = vector.broadcast %18 : vector<32x1xf32> to vector<32x8xf32>
    %20 = arith.addf %17, %19 : vector<32x8xf32>
    %cst_17 = arith.constant 0.000000e+00 : f32
    %21 = vector.broadcast %cst_17 : f32 to vector<32x8xf32>
    %22 = arith.maximumf %20, %21 : vector<32x8xf32>
    %c0_18 = arith.constant 0 : index
    %c0_19 = arith.constant 0 : index
    %23 = vector.load %arg8[%c0_18, %c0_19] : memref<1x32xf32, #tpu.memory_space<vmem>>, vector<1x32xf32>
    %cst_20 = arith.constant dense<0.000000e+00> : vector<1x8xf32>
    %24 = tpu.matmul %23, %22, %cst_20 {dimension_numbers = #tpu.dot_dimension_numbers<[1], [0], [0], [1], [0, 0, 1, 1], [], []>} : vector<1x32xf32>, vector<32x8xf32>, vector<1x8xf32> -> vector<1x8xf32>
    %c0_21 = arith.constant 0 : index
    %c0_22 = arith.constant 0 : index
    %25 = vector.load %arg9[%c0_21, %c0_22] : memref<1x1xf32, #tpu.memory_space<vmem>>, vector<1x1xf32>
    %26 = vector.broadcast %25 : vector<1x1xf32> to vector<1x8xf32>
    %27 = arith.addf %24, %26 : vector<1x8xf32>
    %c0_23 = arith.constant 0 : index
    %c0_24 = arith.constant 0 : index
    %28 = vector.load %arg10[%c0_23, %c0_24] : memref<1x8xf32, #tpu.memory_space<vmem>>, vector<1x8xf32>
    tpu.vector_store %arg10[%c0_23, %c0_24], %27 {strides = array<i32>} : memref<1x8xf32, #tpu.memory_space<vmem>>, vector<1x8xf32>,
    return
  }
  func.func @transform_0(%arg0: i32) -> (i32, i32) {
    %c0_i32 = arith.constant 0 : i32
    %c0_i32_0 = arith.constant 0 : i32
    return %arg0, %c0_i32 : i32, i32
  }
  func.func @transform_1(%arg0: i32) -> (i32, i32) {
    %c0_i32 = arith.constant 0 : i32
    %c0_i32_0 = arith.constant 0 : i32
    %c0_i32_1 = arith.constant 0 : i32
    return %c0_i32, %c0_i32_0 : i32, i32
  }
  func.func @transform_2(%arg0: i32) -> (i32, i32) {
    %c0_i32 = arith.constant 0 : i32
    %c0_i32_0 = arith.constant 0 : i32
    %c0_i32_1 = arith.constant 0 : i32
    return %c0_i32, %c0_i32_0 : i32, i32
  }
  func.func @transform_3(%arg0: i32) -> (i32, i32) {
    %c0_i32 = arith.constant 0 : i32
    %c0_i32_0 = arith.constant 0 : i32
    %c0_i32_1 = arith.constant 0 : i32
    return %c0_i32, %c0_i32_0 : i32, i32
  }
  func.func @transform_4(%arg0: i32) -> (i32, i32) {
    %c0_i32 = arith.constant 0 : i32
    %c0_i32_0 = arith.constant 0 : i32
    %c0_i32_1 = arith.constant 0 : i32
    return %c0_i32, %c0_i32_0 : i32, i32
  }
  func.func @transform_5(%arg0: i32) -> (i32, i32) {
    %c0_i32 = arith.constant 0 : i32
    %c0_i32_0 = arith.constant 0 : i32
    %c0_i32_1 = arith.constant 0 : i32
    return %c0_i32, %c0_i32_0 : i32, i32
  }
  func.func @transform_6(%arg0: i32) -> (i32, i32) {
    %c0_i32 = arith.constant 0 : i32
    %c0_i32_0 = arith.constant 0 : i32
    %c0_i32_1 = arith.constant 0 : i32
    return %c0_i32, %c0_i32_0 : i32, i32
  }
  func.func @transform_7(%arg0: i32) -> (i32, i32) {
    %c0_i32 = arith.constant 0 : i32
    %c0_i32_0 = arith.constant 0 : i32
    %c0_i32_1 = arith.constant 0 : i32
    return %c0_i32, %c0_i32_0 : i32, i32
  }
  func.func @transform_8(%arg0: i32) -> (i32, i32) {
    %c0_i32 = arith.constant 0 : i32
    %c0_i32_0 = arith.constant 0 : i32
    %c0_i32_1 = arith.constant 0 : i32
    return %c0_i32, %c0_i32_0 : i32, i32
  }
  func.func @transform_9(%arg0: i32) -> (i32, i32) {
    %c0_i32 = arith.constant 0 : i32
    %c0_i32_0 = arith.constant 0 : i32
    return %c0_i32, %arg0 : i32, i32
  }
}

</mosaic_0001>

<bundles_post_ra>
// kernel: tpu_custom_call.1
= control target key start
LH: loop header
LB: loop body
LE: loop exit
PB: predicated region body
PF: predicated region fallthrough
CT: control target
= control target key end

     0   :  { %s528_s0 = inlined_call_operand.hbm [shape: f32[8,8], index: 0, kind: input, shape index: {}]   ;;  %s529_s1 = inlined_call_operand.hbm [shape: f32[8,32], index: 1, kind: input, shape index: {}]   ;;  %s530_s2 = inlined_call_operand.vmem [shape: f32[1,32], index: 2, kind: input, shape index: {}]   ;;  %s531_s3 = inlined_call_operand.vmem [shape: f32[32,32], index: 3, kind: input, shape index: {}]   ;;  %s532_s4 = inlined_call_operand.vmem [shape: f32[32,1], index: 4, kind: input, shape index: {}]   ;;  %s533_s5 = inlined_call_operand.vmem [shape: f32[32,32], index: 5, kind: input, shape index: {}]   ;;  %s534_s6 = inlined_call_operand.vmem [shape: f32[32,1], index: 6, kind: input, shape index: {}]   ;;  %s535_s7 = inlined_call_operand.vmem [shape: f32[1,32], index: 7, kind: input, shape index: {}]   ;;  %s536_s8 = inlined_call_operand.<no memory space> [shape: f32[1,1], index: 8, kind: input, shape index: {}]   ;;  %s537_s9 = inlined_call_operand.hbm [shape: f32[1,8], index: 9, kind: output, shape index: {}]  }
   0x1   :  { %v14_v0 = vstv %s536_s8 }
   0x2   :  { %15 = vst [vmem:[#allocation2] sm:$0x1] %v14_v0 }
   0x3   :  { %16 = vsyncpa [#allocation4], 0 }
   0x4   :  { %17 = vsyncpa [#allocation7], 0 }
   0x5   :  { %18 = vsyncpa [#allocation5], 0  ;;  %s24_s13 = sshll.u32 %s528_s0, 4  ;;  %s397_s14 = smov [#allocation3]   ;;  %s25_s13 = int_to_ptr.hbm [resolvable:$true] %s24_s13 }
   0x6   :  { %s26_s15 = sshll.u32 %s397_s14, 4  ;;  %s35_s18 = sshll.u32 %s529_s1, 4  ;;  %s27_s15 = int_to_ptr.vmem [resolvable:$true] %s26_s15  ;;  %s36_s18 = int_to_ptr.hbm [resolvable:$true] %s35_s18 }
   0x7   :  { %29 = dma.hbm_to_vmem [thread:$0]  %s25_s13, 128, %s27_s15, [#allocation4]  }
   0x8   :  { %s398_s19 = smov [#allocation6]  }
   0x9   :  { %s37_s8 = sshll.u32 %s398_s19, 4  ;;  %s38_s8 = int_to_ptr.vmem [resolvable:$true] %s37_s8 }
   0xa   :  { %40 = dma.hbm_to_vmem [thread:$0]  %s36_s18, 128, %s38_s8, [#allocation7]  }
   0xb   :  { %391 = dma.done.wait [#allocation4], 128  }
   0xc   :  { %392 = vsyncadd [#allocation4], 4294967168 }
   0xd   :  { %393 = dma.done.wait [#allocation7], 128  }
   0xe   :  { %394 = vsyncadd [#allocation7], 4294967168  ;;  %vm69_vm0 = vcmask 64512   ;;  %v64_v1 = vld [vmem:[#allocation6] sm:$0xff]  ;;  %v63_v2 = vld [vmem:[#allocation3] sm:$0xff]  ;;  %v399_v5 = vmov 0  }
   0xf   :  { %88 = vmatpush.msra.mxu0 %v64_v1  ;;  %v101_v3 = vld [vmem:[%s532_s4 + $0x18] sm:$0xff]  ;;  %v99_v4 = vld [vmem:[%s532_s4 + $0x8] sm:$0xff]  ;;  %316 = vset.pattern.permute.xlu1 %v399_v5  ;;  %v100_v6 = vld [vmem:[%s532_s4 + $0x10] sm:$0xff]  ;;  %vm122_vm1 = vcmask 261120   ;;  %s400_s25 = smov [#allocation8]   ;;  %s284_s29 = sshll.u32 %s537_s9, 4  ;;  %s285_s29 = int_to_ptr.hbm [resolvable:$true] %s284_s29 }
  0x10   :  { %295 = vmatmul.msk.f32.vlgmr.msra.gmra.mxu0 %vm69_vm0, %v63_v2  ;;  %315 = vset.pattern.permute.xlu0 %v399_v5  ;;  %v98_v7 = vld [vmem:[%s532_s4] sm:$0xff]  ;;  %v176_v8 = vld [vmem:[%s534_s6 + $0x8] sm:$0xff]  ;;  %v97_v15 = vld [vmem:[%s531_s3 + $0x18] sm:$0xff]  ;;  %s282_s26 = sshll.u32 %s400_s25, 4  ;;  %vm275_vm2 = vcmask 57344   ;;  %s283_s26 = int_to_ptr.vmem [resolvable:$true] %s282_s26 }
  0x11   :  { %119 = vperm.xlu0 %315, %v101_v3   ;;  %109 = vperm.xlu1 %316, %v99_v4   ;;  %v175_v9 = vld [vmem:[%s534_s6] sm:$0xff]  ;;  %v95_v16 = vld [vmem:[%s531_s3 + $0x8] sm:$0xff]  ;;  %v96_v17 = vld [vmem:[%s531_s3 + $0x10] sm:$0xff] }
  0x12   :  { %317 = vset.pattern.permute.xlu2 %v399_v5  ;;  %v318_v10 = vld [vmem:[%s530_s2] ss:$0 sm:$0xff]  ;;  %v178_v19 = vld [vmem:[%s534_s6 + $0x18] sm:$0xff]  ;;  %v177_v26 = vld [vmem:[%s534_s6 + $0x10] sm:$0xff] }
  0x13   :  { %v94_v14 = vld [vmem:[%s531_s3] sm:$0xff]  ;;  %196 = vperm.xlu2 %317, %v178_v19   ;;  %v173_v38 = vld [vmem:[%s533_s5 + $0x10] sm:$0xff]  ;;  %v172_v39 = vld [vmem:[%s533_s5 + $0x8] sm:$0xff] }
  0x14   :  { %v245_v32 = vld [vmem:[#allocation2] sm:$0x1]  ;;  %v174_v40 = vld [vmem:[%s533_s5 + $0x18] sm:$0xff] }
  0x15   :  { %v171_v37 = vld [vmem:[%s533_s5] sm:$0xff] }
  0x16   :  { %v244_v57 = vld [vmem:[%s535_s7] sm:$0x1] }
  0x19   :  { %114 = vperm.xlu0 %315, %v100_v6   ;;  %104 = vperm.xlu1 %316, %v98_v7  }
  0x1b   :  { %191 = vperm.xlu2 %317, %v177_v26  }
  0x21   :  { %186 = vperm.xlu0 %315, %v176_v8   ;;  %181 = vperm.xlu1 %316, %v175_v9  }
  0x23   :  { %248 = vperm.xlu2 %317, %v245_v32  }
  0x6d   :  { %v197_v41 = vpop.permute.xlu2 %196 }
  0x75   :  { %v192_v44 = vpop.permute.xlu2 %191 }
  0x7d   :  { %v249_v58 = vpop.permute.xlu2 %248 }
  0x7e   :  { %v251_v59 = vperm.slane %v249_v58, 0 }
  0x83   :  { %v120_v20 = vpop.permute.xlu0 %119  ;;  %v110_v21 = vpop.permute.xlu1 %109 }
  0x8b   :  { %v115_v27 = vpop.permute.xlu0 %114  ;;  %v105_v28 = vpop.permute.xlu1 %104 }
  0x8d   :  { %v90_v11 = vpop.f32.mrf.mxu0 }
  0x8e   :  { %v91_v12 = vadd.f32 %v318_v10, %v90_v11 }
  0x90   :  { %v93_v13 = vmax.f32 %v91_v12, 0.0 }
  0x92   :  { %296 = vmatpush.xpose.msk.msra.mxu1 %vm122_vm1, %v93_v13  ;;  %306 = vmatpush.xpose.msk.msra.mxu3 %vm122_vm1, %v93_v13 }
  0x93   :  { %v187_v49 = vpop.permute.xlu0 %186  ;;  %v182_v52 = vpop.permute.xlu1 %181 }
  0x95   :  { %297 = vmatmul.msk.f32.vlgmr.msra.gmra.mxu1 %vm122_vm1, %v94_v14  ;;  %300 = vmatmul.msk.f32.vlgmr.msra.gmra.mxu3 %vm122_vm1, %v97_v15 }
  0x9d   :  { %298 = vmatmul.msk.f32.gmra.mxu1 %vm122_vm1, %v95_v16 }
  0xa5   :  { %299 = vmatmul.msk.f32.gmra.mxu1 %vm122_vm1, %v96_v17 }
 0x112   :  { %v155_v18 = vpop.f32.mrf.mxu1 }
 0x113   :  { %v156_v33 = vadd.f32 %v155_v18, %v105_v28 }
 0x115   :  { %v167_v36 = vmax.f32 %v156_v33, 0.0 }
 0x118   :  { %v164_v22 = vpop.f32.mrf.mxu3 }
 0x119   :  { %v165_v23 = vadd.f32 %v164_v22, %v120_v20 }
 0x11a   :  { %v158_v24 = vpop.f32.mrf.mxu1 }
 0x11b   :  { %v170_v25 = vmax.f32 %v165_v23, 0.0  ;;  %v159_v30 = vadd.f32 %v158_v24, %v110_v21 }
 0x11d   :  { %223 = vmatpush.msrb.mxu0 %v170_v25  ;;  %307 = vmatpush.msra.mxu2 %v170_v25  ;;  %v168_v35 = vmax.f32 %v159_v30, 0.0 }
 0x122   :  { %v161_v29 = vpop.f32.mrf.mxu1 }
 0x123   :  { %v162_v31 = vadd.f32 %v161_v29, %v115_v27 }
 0x125   :  { %v169_v34 = vmax.f32 %v162_v31, 0.0 }
 0x127   :  { %224 = vmatpush.msrb.mxu0 %v169_v34  ;;  %308 = vmatpush.msra.mxu2 %v169_v34 }
 0x129   :  { %225 = vmatpush.msrb.mxu0 %v168_v35  ;;  %309 = vmatpush.msra.mxu2 %v168_v35 }
 0x12b   :  { %226 = vmatpush.msrb.mxu0 %v167_v36  ;;  %310 = vmatpush.msra.mxu2 %v167_v36 }
 0x12c   :  { %301 = vmatmul.msk.f32.vlgmr.msrb.gmra.mxu0 %vm122_vm1, %v171_v37  ;;  %303 = vmatmul.msk.f32.vlgmr.msra.gmra.mxu2 %vm122_vm1, %v173_v38 }
 0x134   :  { %302 = vmatmul.msk.f32.gmra.mxu0 %vm122_vm1, %v172_v39  ;;  %304 = vmatmul.msk.f32.gmra.mxu2 %vm122_vm1, %v174_v40 }
 0x1a9   :  { %v228_v42 = vpop.f32.mrf.mxu0 }
 0x1aa   :  { %v229_v53 = vadd.f32 %v228_v42, %v182_v52 }
 0x1ac   :  { %v240_v56 = vmax.f32 %v229_v53, 0.0 }
 0x1af   :  { %v234_v43 = vpop.f32.mrf.mxu2 }
 0x1b0   :  { %v235_v47 = vadd.f32 %v234_v43, %v192_v44 }
 0x1b1   :  { %v231_v45 = vpop.f32.mrf.mxu0 }
 0x1b2   :  { %v232_v50 = vadd.f32 %v231_v45, %v187_v49  ;;  %v242_v54 = vmax.f32 %v235_v47, 0.0 }
 0x1b4   :  { %v241_v55 = vmax.f32 %v232_v50, 0.0 }
 0x1b7   :  { %v237_v46 = vpop.f32.mrf.mxu2 }
 0x1b8   :  { %v238_v48 = vadd.f32 %v237_v46, %v197_v41 }
 0x1ba   :  { %v243_v51 = vmax.f32 %v238_v48, 0.0 }
 0x1bc   :  { %267 = vmatpush.msrb.mxu3 %v243_v51 }
 0x1be   :  { %268 = vmatpush.msrb.mxu3 %v242_v54 }
 0x1c0   :  { %269 = vmatpush.msrb.mxu3 %v241_v55 }
 0x1c2   :  { %270 = vmatpush.msrb.mxu3 %v240_v56 }
 0x1c3   :  { %305 = vmatmul.msk.f32.vlgmr.msrb.gmra.mxu3 %vm122_vm1, %v244_v57 }
 0x246   :  { %v272_v60 = vpop.f32.mrf.mxu3 }
 0x247   :  { %v273_v61 = vadd.f32 %v272_v60, %v251_v59 }
 0x249   :  { %276 = vst.msk [vmem:[#allocation8] sm:$0x1] %vm275_vm2, %v273_v61 }
 0x24a   :  { %287 = dma.vmem_to_hbm [thread:$0]  %s283_s26, 16, %s285_s29, [#allocation5]  }
 0x24b   :  { %395 = dma.done.wait [#allocation5], 16  }
 0x24c   :  { %396 = vsyncadd [#allocation5], 4294967280 }
 0x24d   :  { %292 = vsyncpa [#allocation4], 1 }
 0x24e   :  { %293 = vsyncpa [#allocation7], 1 }
 0x24f   :  { %294 = vsyncpa [#allocation5], 1 }

</bundles_post_ra>
